<compile_context>
chip_gen: v7x
topology: tpu7x:2x2x1
jax: 0.10.0
libtpu: 0.0.40
codegen_flags: <defaults>
</compile_context>

<pallas_src>
import jax
import jax.numpy as jnp
from jax.experimental import pallas as pl
from jax.experimental.pallas import tpu as pltpu


def _round_up(x: int, m: int) -> int:
    return ((x + m - 1) // m) * m


def _vmem_footprint_bytes(tm, tn, T, xb, wb, ob, sb):
    # double-buffered x / W / out windows + single softplus scratch
    return 2 * tm * T * xb + 2 * T * tn * wb + 2 * tm * tn * ob + T * tn * sb


def decoder_kernel(x_ref, w_ref, o_ref, wsp_ref):
    # softplus(W) = log(1 + exp(W)), computed once per vocab tile: the W tile
    # is invariant across the inner (batch) grid axis, so only recompute when
    # the batch index resets to 0 (a new vocab tile just arrived).
    @pl.when(pl.program_id(1) == 0)
    def _():
        wsp_ref[...] = jnp.logaddexp(w_ref[...], 0.0).astype(wsp_ref.dtype)

    # Hot path: (tm, T) @ (T, tn) on the MXU, f32 accumulation.
    o_ref[...] = jnp.dot(
        x_ref[...].astype(wsp_ref.dtype),
        wsp_ref[...],
        preferred_element_type=jnp.float32,
    ).astype(o_ref.dtype)


def decoder_forward(x, W, *, tm=None, tn=None, mxu_bf16=False, out_dtype=None):
    """x: (batch, topics), W: (topics, vocab) -> (batch, vocab)."""
    M, T = x.shape
    T2, V = W.shape
    assert T == T2

    out_dtype = x.dtype if out_dtype is None else out_dtype
    sp_dtype = jnp.bfloat16 if mxu_bf16 else jnp.float32  # default f32 = module semantics

    xb = jnp.dtype(x.dtype).itemsize
    wb = jnp.dtype(W.dtype).itemsize
    ob = jnp.dtype(out_dtype).itemsize
    sb = jnp.dtype(sp_dtype).itemsize

    # ---- batch tile: full M extent (allowed even when M % 8 != 0) or 256. ----
    if tm is None:
        tm = M if M <= 512 else 256
    tm = min(tm, M)
    if tm != M:
        tm = _round_up(tm, 8)  # (8, 128) rule: divisible by 8 or equal full dim

    # ---- vocab tile: lane-dense, largest under a ~20 MiB VMEM budget, and ----
    # ---- kept to >= 2 tiles when possible so both v7x TensorCores get work. --
    if tn is None:
        if V <= 128:
            tn = V
        else:
            v128 = _round_up(V, 128)
            budget = 20 * 1024 * 1024
            tn_max = min(8192, v128)
            tn = 128
            cand = 256
            while cand <= tn_max:
                if _vmem_footprint_bytes(tm, cand, T, xb, wb, ob, sb) <= budget:
                    tn = cand
                cand += 128
            if v128 >= 256:
                half = _round_up(v128 // 2, 128)
                if half < v128:
                    tn = min(tn, half)  # guarantee >= 2 vocab (parallel) tiles
    else:
        tn = min(tn, V)
        if tn != V:
            tn = _round_up(tn, 128)

    grid = (pl.cdiv(V, tn), pl.cdiv(M, tm))  # vocab outer (parallel), batch inner

    footprint = _vmem_footprint_bytes(tm, tn, T, xb, wb, ob, sb)
    vmem_limit = int(min(48 * 1024 * 1024,
                         max(32 * 1024 * 1024, footprint + 8 * 1024 * 1024)))

    return pl.pallas_call(
        decoder_kernel,
        out_shape=jax.ShapeDtypeStruct((M, V), out_dtype),
        grid_spec=pltpu.PrefetchScalarGridSpec(
            num_scalar_prefetch=0,
            grid=grid,
            in_specs=[
                pl.BlockSpec((tm, T), lambda j, i: (i, 0)),   # x rows tile
                pl.BlockSpec((T, tn), lambda j, i: (0, j)),   # W vocab tile
            ],
            out_specs=pl.BlockSpec((tm, tn), lambda j, i: (i, j)),
            scratch_shapes=[pltpu.VMEM((T, tn), sp_dtype)],   # softplus(W) tile
        ),
        compiler_params=pltpu.CompilerParams(
            # vocab tiles are independent -> shard across TCs (v7x megacore);
            # batch axis carries the softplus-scratch gate -> arbitrary.
            dimension_semantics=("parallel", "arbitrary"),
            vmem_limit_bytes=vmem_limit,
        ),
    )(x, W)


if __name__ == "__main__":
    key = jax.random.PRNGKey(0)
    k_w, k_x, k_w2, k_x2 = jax.random.split(key, 4)

    # Case 1: small aligned shapes consistent with the module (single grid step).
    batch, topics, vocab = 16, 32, 128
    W = jax.random.uniform(k_w, (topics, vocab), dtype=jnp.float32)  # torch.rand init
    x = jax.random.normal(k_x, (batch, topics), dtype=jnp.float32)
    out = jax.block_until_ready(decoder_forward(x, W))
    ref = x @ jnp.logaddexp(W, 0.0)
    assert out.shape == (batch, vocab)
    assert jnp.allclose(out, ref, atol=1e-4, rtol=1e-4)

    # Case 2: ragged batch (20 rows) + ragged vocab (300) -> two vocab tiles,
    # exercising the in-kernel ragged-block handling (no wrapper pad / slice
    # passes) and the per-vocab-tile softplus gate.
    batch2, vocab2 = 20, 300
    W2 = jax.random.uniform(k_w2, (topics, vocab2), dtype=jnp.float32)
    x2 = jax.random.normal(k_x2, (batch2, topics), dtype=jnp.float32)
    out2 = jax.block_until_ready(decoder_forward(x2, W2))
    ref2 = x2 @ jnp.logaddexp(W2, 0.0)
    assert out2.shape == (batch2, vocab2)
    assert jnp.allclose(out2, ref2, atol=1e-4, rtol=1e-4)

    print("KERNEL_OK")
</pallas_src>

<mosaic_0001>
module attributes {stable_mosaic.version = 11 : i64} {
  func.func @decoder_kernel(%arg0: i32, %arg1: i32, %arg2: memref<16x32xf32, #tpu.memory_space<vmem>>, %arg3: memref<32x128xf32, #tpu.memory_space<vmem>>, %arg4: memref<16x128xf32, #tpu.memory_space<vmem>>, %arg5: memref<32x128xf32, #tpu.memory_space<vmem>>) attributes {dimension_semantics = [#tpu.dimension_semantics<parallel>, #tpu.dimension_semantics<arbitrary>], iteration_bounds = array<i64: 1, 1>, scalar_prefetch = 0 : i64, scratch_operands = 1 : i64, tpu.core_type = #tpu.core_type<tc>, window_params = [{transform_indices = @transform_0, window_bounds = array<i64: 16, 32>}, {transform_indices = @transform_1, window_bounds = array<i64: 32, 128>}, {transform_indices = @transform_2, window_bounds = array<i64: 16, 128>}]} {
    %c0_i32 = arith.constant 0 : i32
    %0 = arith.cmpi eq, %arg1, %c0_i32 : i32
    %1 = arith.extui %0 : i1 to i32
    %c0_i32_0 = arith.constant 0 : i32
    %2 = arith.cmpi ne, %1, %c0_i32_0 : i32
    scf.if %2 {
      %c0_6 = arith.constant 0 : index
      %c0_7 = arith.constant 0 : index
      %7 = vector.load %arg3[%c0_6, %c0_7] : memref<32x128xf32, #tpu.memory_space<vmem>>, vector<32x128xf32>
      %cst_8 = arith.constant 0.000000e+00 : f32
      %8 = vector.broadcast %cst_8 : f32 to vector<32x128xf32>
      %9 = arith.maximumf %7, %8 : vector<32x128xf32>
      %10 = vector.broadcast %cst_8 : f32 to vector<32x128xf32>
      %11 = arith.subf %7, %10 : vector<32x128xf32>
      %12 = arith.cmpf one, %11, %11 : vector<32x128xf32>
      %13 = vector.broadcast %cst_8 : f32 to vector<32x128xf32>
      %14 = arith.addf %7, %13 : vector<32x128xf32>
      %15 = math.absf %11 : vector<32x128xf32>
      %cst_9 = arith.constant 0.000000e+00 : f32
      %16 = vector.broadcast %cst_9 : f32 to vector<32x128xf32>
      %17 = arith.subf %16, %15 : vector<32x128xf32>
      %18 = math.exp %17 : vector<32x128xf32>
      %19 = math.log1p %18 : vector<32x128xf32>
      %20 = arith.addf %9, %19 : vector<32x128xf32>
      %21 = arith.select %12, %14, %20 : vector<32x128xi1>, vector<32x128xf32>
      %c0_10 = arith.constant 0 : index
      %c0_11 = arith.constant 0 : index
      %22 = vector.load %arg5[%c0_10, %c0_11] : memref<32x128xf32, #tpu.memory_space<vmem>>, vector<32x128xf32>
      tpu.vector_store %arg5[%c0_10, %c0_11], %21 {strides = array<i32>} : memref<32x128xf32, #tpu.memory_space<vmem>>, vector<32x128xf32>,
    } else {
    }
    %c0 = arith.constant 0 : index
    %c0_1 = arith.constant 0 : index
    %3 = vector.load %arg2[%c0, %c0_1] : memref<16x32xf32, #tpu.memory_space<vmem>>, vector<16x32xf32>
    %c0_2 = arith.constant 0 : index
    %c0_3 = arith.constant 0 : index
    %4 = vector.load %arg5[%c0_2, %c0_3] : memref<32x128xf32, #tpu.memory_space<vmem>>, vector<32x128xf32>
    %cst = arith.constant dense<0.000000e+00> : vector<16x128xf32>
    %5 = tpu.matmul %3, %4, %cst {dimension_numbers = #tpu.dot_dimension_numbers<[1], [0], [0], [1], [0, 0, 1, 1], [], []>} : vector<16x32xf32>, vector<32x128xf32>, vector<16x128xf32> -> vector<16x128xf32>
    %c0_4 = arith.constant 0 : index
    %c0_5 = arith.constant 0 : index
    %6 = vector.load %arg4[%c0_4, %c0_5] : memref<16x128xf32, #tpu.memory_space<vmem>>, vector<16x128xf32>
    tpu.vector_store %arg4[%c0_4, %c0_5], %5 {strides = array<i32>} : memref<16x128xf32, #tpu.memory_space<vmem>>, vector<16x128xf32>,
    return
  }
  func.func @transform_0(%arg0: i32, %arg1: i32) -> (i32, i32) {
    %c0_i32 = arith.constant 0 : i32
    %c0_i32_0 = arith.constant 0 : i32
    return %arg1, %c0_i32 : i32, i32
  }
  func.func @transform_1(%arg0: i32, %arg1: i32) -> (i32, i32) {
    %c0_i32 = arith.constant 0 : i32
    %c0_i32_0 = arith.constant 0 : i32
    return %c0_i32, %arg0 : i32, i32
  }
  func.func @transform_2(%arg0: i32, %arg1: i32) -> (i32, i32) {
    %c0_i32 = arith.constant 0 : i32
    return %arg1, %arg0 : i32, i32
  }
}

</mosaic_0001>

<bundles_post_ra>
// kernel: tpu_custom_call.1
= control target key start
LH: loop header
LB: loop body
LE: loop exit
PB: predicated region body
PF: predicated region fallthrough
CT: control target
= control target key end

     0   :  { %7 = vsyncpa [#allocation4], 0  ;;  %s462_s0 = inlined_call_operand.hbm [shape: f32[16,32], index: 0, kind: input, shape index: {}]   ;;  %s463_s1 = inlined_call_operand.hbm [shape: f32[32,128], index: 1, kind: input, shape index: {}]   ;;  %s464_s2 = inlined_call_operand.hbm [shape: f32[16,128], index: 2, kind: output, shape index: {}]  }
   0x1   :  { %8 = vsyncpa [#allocation7], 0 }
   0x2   :  { %9 = vsyncpa [#allocation5], 0  ;;  %s352_s9 = smov [#allocation3]   ;;  %s280_s13 = scalar_lea.hbm %s462_s0, 256 }
   0x3   :  { %s15_s10 = sshll.u32 %s352_s9, 4  ;;  %p281_p0 = scmp.ne.s32.totalorder %s462_s0, %s280_s13  ;;  %s16_s10 = int_to_ptr.vmem [resolvable:$true] %s15_s10 }
   0x4   :  { %p284_p1 = scmp.lt.u32.totalorder %s280_s13, %s462_s0 }
   0x6   :  { %p286_p2 = pnand %p284_p1, %p281_p0 }
   0x8   :  { %289 = shalt.err (!%p286_p2)
}
   0x9   :  { %s290_s18 = scalar_lea.vmem %s16_s10, 256  ;;  %p295_p4 = scmp.lt.s32.totalorder %s16_s10, %s16_s10 }
   0xa   :  { %p291_p3 = scmp.ne.s32.totalorder %s16_s10, %s290_s18  ;;  %p296_p5 = scmp.lt.s32.totalorder %s290_s18, %s290_s18 }
   0xc   :  { %p297_p6 = por %p296_p5, %p295_p4 }
   0xe   :  { %p298_p7 = pnand %p297_p6, %p291_p3 }
  0x10   :  { %301 = shalt.err (!%p298_p7)
}
  0x11   :  { %s353_s19 = smov 128   ;;  %s354_s20 = smov 8  }
  0x12   :  { %21 = dma.hbm_to_vmem [thread:$0]  %s462_s0, 256, %s16_s10, [#allocation4], %s353_s19, %s353_s19, %s354_s20  }
  0x13   :  { %s355_s23 = smov [#allocation6]   ;;  %s302_s27 = scalar_lea.hbm %s463_s1, 512 }
  0x14   :  { %s27_s24 = sshll.u32 %s355_s23, 4  ;;  %p303_p8 = scmp.ne.s32.totalorder %s463_s1, %s302_s27  ;;  %s28_s24 = int_to_ptr.vmem [resolvable:$true] %s27_s24 }
  0x15   :  { %p306_p9 = scmp.lt.u32.totalorder %s302_s27, %s463_s1 }
  0x17   :  { %p308_p10 = pnand %p306_p9, %p303_p8 }
  0x19   :  { %311 = shalt.err (!%p308_p10)
}
  0x1a   :  { %s312_s4 = scalar_lea.vmem %s28_s24, 512  ;;  %p317_p12 = scmp.lt.s32.totalorder %s28_s24, %s28_s24 }
  0x1b   :  { %p313_p11 = scmp.ne.s32.totalorder %s28_s24, %s312_s4  ;;  %p318_p13 = scmp.lt.s32.totalorder %s312_s4, %s312_s4 }
  0x1d   :  { %p319_p0 = por %p318_p13, %p317_p12 }
  0x1f   :  { %p320_p1 = pnand %p319_p0, %p313_p11 }
  0x21   :  { %323 = shalt.err (!%p320_p1)
}
  0x22   :  { %33 = dma.hbm_to_vmem [thread:$0]  %s463_s1, 512, %s28_s24, [#allocation7], %s353_s19, %s353_s19, %s354_s20  }
  0x23   :  { %346 = dma.done.wait [#allocation4], 256  }
  0x24   :  { %347 = vsyncadd [#allocation4], 4294967040 }
  0x25   :  { %348 = dma.done.wait [#allocation7], 512  }
  0x26   :  { %349 = vsyncadd [#allocation7], 4294966784  ;;  %vm130_vm0 = vcmask 261120   ;;  %v402_v0 = vld [vmem:[#allocation6] sm:$0xff]  ;;  %v404_v1 = vld [vmem:[#allocation6 + $0x8] sm:$0xff]  ;;  %s356_s1 = smov [#allocation8]  }
  0x27   :  { %v406_v2 = vld [vmem:[#allocation6 + $0x10] sm:$0xff]  ;;  %v408_v3 = vld [vmem:[#allocation6 + $0x18] sm:$0xff]  ;;  %v60_v5 = vand.u32 2147483647, %v402_v0  ;;  %v61_v6 = vand.u32 2147483647, %v404_v1  ;;  %vm52_vm3 = vcmp.ne.f32.partialorder %v402_v0, %v402_v0  ;;  %vm53_vm5 = vcmp.ne.f32.partialorder %v404_v1, %v404_v1 }
  0x28   :  { %v124_v4 = vld [vmem:[#allocation3] sm:$0xff]  ;;  %v62_v7 = vand.u32 2147483647, %v406_v2  ;;  %v63_v8 = vand.u32 2147483647, %v408_v3  ;;  %v48_v38 = vmax.f32 %v402_v0, 0.0  ;;  %vm54_vm7 = vcmp.ne.f32.partialorder %v406_v2, %v406_v2 }
  0x29   :  { %248 = vmatprep.mubr.msk.f32.mxu0 %vm130_vm0, %v124_v4  ;;  %v64_v9 = vsub.f32 0.0, %v60_v5  ;;  %v65_v10 = vsub.f32 0.0, %v61_v6  ;;  %v49_v43 = vmax.f32 %v404_v1, 0.0  ;;  %v50_v49 = vmax.f32 %v406_v2, 0.0  ;;  %s219_s6 = sshll.u32 %s356_s1, 4  ;;  %s220_s6 = int_to_ptr.vmem [resolvable:$true] %s219_s6 }
  0x2a   :  { %v66_v11 = vsub.f32 0.0, %v62_v7  ;;  %v67_v12 = vsub.f32 0.0, %v63_v8  ;;  %v51_v56 = vmax.f32 %v408_v3, 0.0  ;;  %vm55_vm8 = vcmp.ne.f32.partialorder %v408_v3, %v408_v3  ;;  %s324_s7 = scalar_lea.vmem %s220_s6, 256  ;;  %p329_p3 = scmp.lt.s32.totalorder %s220_s6, %s220_s6 }
  0x2b   :  { %v68_v13 = vmul.f32 1.442695, %v64_v9  ;;  %v70_v14 = vmul.f32 1.442695, %v65_v10  ;;  %v125_v9 = vld [vmem:[#allocation3 + $0x8] sm:$0xff]  ;;  %p325_p2 = scmp.ne.s32.totalorder %s220_s6, %s324_s7  ;;  %p330_p4 = scmp.lt.s32.totalorder %s324_s7, %s324_s7 }
  0x2c   :  { %v72_v15 = vmul.f32 1.442695, %v66_v11  ;;  %v74_v16 = vmul.f32 1.442695, %v67_v12 }
  0x2d   :  { %264 = vpow2.f32 %v68_v13  ;;  %p331_p5 = por %p330_p4, %p329_p3 }
  0x2e   :  { %266 = vpow2.f32 %v70_v14 }
  0x2f   :  { %268 = vpow2.f32 %v72_v15  ;;  %p332_p6 = pnand %p331_p5, %p325_p2 }
  0x30   :  { %270 = vpow2.f32 %v74_v16 }
  0x37   :  { %v265_v17 = vpop.eup %264 }
  0x38   :  { %v267_v18 = vpop.eup %266  ;;  %v76_v19 = vadd.f32 1.0, %v265_v17  ;;  %v79_v24 = vmul.f32 -0.5, %v265_v17  ;;  %v82_v30 = vand.u32 2147483647, %v265_v17 }
  0x39   :  { %v269_v20 = vpop.eup %268  ;;  %v85_v21 = vadd.f32 1.0, %v267_v18  ;;  %v88_v25 = vmul.f32 -0.5, %v267_v18  ;;  %v91_v32 = vand.u32 2147483647, %v267_v18 }
  0x3a   :  { %v271_v22 = vpop.eup %270  ;;  %272 = vlog2.f32 %v76_v19  ;;  %v94_v23 = vadd.f32 1.0, %v269_v20  ;;  %v97_v27 = vmul.f32 -0.5, %v269_v20  ;;  %v80_v28 = vadd.f32 1.0, %v79_v24 }
  0x3b   :  { %274 = vlog2.f32 %v85_v21  ;;  %v103_v26 = vadd.f32 1.0, %v271_v22  ;;  %v106_v29 = vmul.f32 -0.5, %v271_v22  ;;  %v89_v31 = vadd.f32 1.0, %v88_v25 }
  0x3c   :  { %276 = vlog2.f32 %v94_v23  ;;  %v98_v33 = vadd.f32 1.0, %v97_v27  ;;  %v100_v34 = vand.u32 2147483647, %v269_v20  ;;  %v81_v35 = vmul.f32 %v265_v17, %v80_v28 }
  0x3d   :  { %278 = vlog2.f32 %v103_v26  ;;  %v107_v36 = vadd.f32 1.0, %v106_v29  ;;  %vm416_vm1 = vcmp.lt.f32.partialorder %v82_v30, 0.0004427343  ;;  %v90_v40 = vmul.f32 %v267_v18, %v89_v31 }
  0x3e   :  { %v109_v41 = vand.u32 2147483647, %v271_v22  ;;  %vm421_vm2 = vcmp.lt.f32.partialorder %v91_v32, 0.0004427343  ;;  %v99_v46 = vmul.f32 %v269_v20, %v98_v33  ;;  %vm101_vm4 = vcmp.lt.f32.partialorder %v100_v34, 0.0004427343 }
  0x3f   :  { %v108_v52 = vmul.f32 %v271_v22, %v107_v36 }
  0x40   :  { %vm110_vm6 = vcmp.lt.f32.partialorder %v109_v41, 0.0004427343 }
  0x44   :  { %v273_v37 = vpop.eup %272 }
  0x45   :  { %v275_v42 = vpop.eup %274  ;;  %v78_v44 = vmul.f32 0.6931472, %v273_v37 }
  0x46   :  { %v277_v47 = vpop.eup %276  ;;  %v87_v48 = vmul.f32 0.6931472, %v275_v42 }
  0x47   :  { %v84_v50 = vsel %vm416_vm1, %v81_v35, %v78_v44  ;;  %v96_v51 = vmul.f32 0.6931472, %v277_v47  ;;  %v279_v53 = vpop.eup %278 }
  0x48   :  { %v93_v54 = vsel %vm421_vm2, %v90_v40, %v87_v48  ;;  %v112_v55 = vadd.f32 %v84_v50, %v48_v38  ;;  %v105_v59 = vmul.f32 0.6931472, %v279_v53 }
  0x49   :  { %v113_v57 = vadd.f32 %v93_v54, %v49_v43  ;;  %v102_v58 = vsel %vm101_vm4, %v99_v46, %v96_v51 }
  0x4a   :  { %v116_v60 = vsel %vm52_vm3, %v402_v0, %v112_v55  ;;  %v114_v61 = vadd.f32 %v102_v58, %v50_v49  ;;  %v111_v63 = vsel %vm110_vm6, %v108_v52, %v105_v59 }
  0x4b   :  { %v117_v62 = vsel %vm53_vm5, %v404_v1, %v113_v57  ;;  %v115_v5 = vadd.f32 %v111_v63, %v51_v56 }
  0x4c   :  { %v251_v4 = vpack.c.bf16 %v117_v62, %v116_v60  ;;  %v118_v6 = vsel %vm54_vm7, %v406_v2, %v114_v61 }
  0x4d   :  { %v119_v7 = vsel %vm55_vm8, %v408_v3, %v115_v5 }
  0x4e   :  { %252 = vmatprep.subr.bf16.mxu0 %v251_v4  ;;  %v255_v8 = vpack.c.bf16 %v119_v7, %v118_v6 }
  0x4f   :  { %254 = vmatpush3.bf16.msra.mxu0 %v251_v4 }
  0x50   :  { %256 = vmatprep.subr.bf16.mxu0 %v255_v8 }
  0x53   :  { %258 = vmatpush3.bf16.msra.mxu0 %v255_v8 }
  0x56   :  { %249 = vmatmul.mubr.msk.f32.vlgmr.msra.gmra.mrb[0].mxu0 %vm130_vm0, %v125_v9 }
 0x129   :  { %v250_v0 = vpop.f32.mrb[0].mxu0 }
 0x12a   :  { %213 = vst [vmem:[#allocation8 + $0x8] sm:$0xff] %v250_v0  ;;  %v203_v1 = vpop.f32.mrb[1].mxu0 }
 0x12b   :  { %212 = vst [vmem:[#allocation8] sm:$0xff] %v203_v1 }
 0x12c   :  { %335 = shalt.err (!%p332_p6)
}
 0x12d   :  { %s336_s10 = scalar_lea.hbm %s464_s2, 256 }
 0x12e   :  { %p337_p7 = scmp.ne.s32.totalorder %s464_s2, %s336_s10  ;;  %p340_p8 = scmp.lt.u32.totalorder %s336_s10, %s464_s2 }
 0x130   :  { %p342_p9 = pnand %p340_p8, %p337_p7 }
 0x132   :  { %345 = shalt.err (!%p342_p9)
}
 0x133   :  { %225 = dma.vmem_to_hbm [thread:$0]  %s220_s6, 256, %s464_s2, [#allocation5], %s353_s19, %s353_s19, %s354_s20  }
 0x134   :  { %350 = dma.done.wait [#allocation5], 256  }
 0x135   :  { %351 = vsyncadd [#allocation5], 4294967040 }
 0x136   :  { %229 = vsyncpa [#allocation4], 1 }
 0x137   :  { %230 = vsyncpa [#allocation7], 1 }
 0x138   :  { %231 = vsyncpa [#allocation5], 1 }

</bundles_post_ra>
